<compile_context>
chip_gen: v7x
topology: tpu7x:2x2x1
jax: 0.10.0
libtpu: 0.0.40
codegen_flags: <defaults>
</compile_context>

<pallas_src>
import math

import jax
import jax.numpy as jnp
import numpy as np
from jax import lax
from jax.experimental import pallas as pl
from jax.experimental.pallas import tpu as pltpu

# ---- config (mirrors the LFM2Config fields used by LFM2Attention, small) ----
HIDDEN = 64
NUM_HEADS = 4
NUM_KV_HEADS = 2
HEAD_DIM = HIDDEN // NUM_HEADS            # 16
N_REP = NUM_HEADS // NUM_KV_HEADS         # 2
KV_DIM = NUM_KV_HEADS * HEAD_DIM          # 32
QKV_DIM = HIDDEN + 2 * KV_DIM             # 128 (lane-dense fused projection width)
EPS = 1e-6
ROPE_THETA = 10000.0
BATCH = 2
SEQ = 8
BS = BATCH * SEQ

# row offsets inside the packed constants slab (all multiples of 8 sublanes)
R_WQKV = 0                                # (HIDDEN, 128)   fused Wq|Wk|Wv
R_AVG = R_WQKV + HIDDEN                   # (128, 128)      head-mean broadcast
R_ROT = R_AVG + QKV_DIM                   # (128, 128)      diag(gain) @ rotate_half
R_COS = R_ROT + QKV_DIM                   # (BS, 128)       cos * gain (per row = b*S+s)
R_SIN = R_COS + BS                        # (BS, 128)       sin (gain lives in R_ROT)
R_WO = R_SIN + BS                         # (128, 128)      per-batch block-diag o_proj
R_TOT = R_WO + BATCH * HIDDEN             # 480 rows total


def lfm2_attention_kernel(x_ref, c_ref, o_ref, slab_ref):
    x = x_ref[...]                                               # (B*S, H) f32

    wqkv = c_ref[R_WQKV:R_WQKV + HIDDEN, :]                      # (64, 128)
    avg_mat = c_ref[R_AVG:R_AVG + QKV_DIM, :]                    # (128, 128)
    rot_g = c_ref[R_ROT:R_ROT + QKV_DIM, :]                      # (128, 128)
    cos_g = c_ref[R_COS:R_COS + BS, :]                           # (16, 128)
    sin_g = c_ref[R_SIN:R_SIN + BS, :]                           # (16, 128)
    wo_bd = c_ref[R_WO:R_WO + BATCH * HIDDEN, :]                 # (128, 128)

    # fused Q|K|V projection -> lane-dense (B*S, 128)
    qkv = jnp.dot(x, wqkv, preferred_element_type=jnp.float32)

    # per-head RMSNorm: var is 0 for the v lanes (zero avg_mat columns) and
    # cos_g undoes the resulting rsqrt(EPS), so no lane select is needed.
    var = jnp.dot(qkv * qkv, avg_mat, preferred_element_type=jnp.float32)
    y = qkv * lax.rsqrt(var + EPS)

    # RoPE: rotate_half folded into a signed block-permutation matmul; the RMS
    # gains and the q-side 1/sqrt(head_dim) are pre-folded into cos_g / rot_g.
    roped = (y * cos_g +
             jnp.dot(y, rot_g, preferred_element_type=jnp.float32) * sin_g)

    # causal mask for the rep-head-stacked (2*S, S) score block
    rows = lax.broadcasted_iota(jnp.int32, (N_REP * SEQ, SEQ), 0)
    cols = lax.broadcasted_iota(jnp.int32, (N_REP * SEQ, SEQ), 1)
    future = cols > (rows & (SEQ - 1))
    # TODO(synk): only the attention_mask=None (causal) path of the PyTorch
    # forward is implemented; an explicit additive attention_mask is not wired in.

    for b in range(BATCH):
        r0 = b * SEQ
        for g in range(NUM_KV_HEADS):
            h0 = g * N_REP
            # the two query heads sharing this KV head, stacked along sublanes
            q_pair = jnp.concatenate(
                [roped[r0:r0 + SEQ,
                       (h0 + r) * HEAD_DIM:(h0 + r + 1) * HEAD_DIM]
                 for r in range(N_REP)], axis=0)                 # (2S, d)
            k_g = roped[r0:r0 + SEQ,
                        HIDDEN + g * HEAD_DIM:HIDDEN + (g + 1) * HEAD_DIM]
            v_g = roped[r0:r0 + SEQ,
                        HIDDEN + KV_DIM + g * HEAD_DIM:
                        HIDDEN + KV_DIM + (g + 1) * HEAD_DIM]

            # one score matmul + one softmax + one PV matmul per (batch, kv)
            sc = lax.dot_general(q_pair, k_g, (((1,), (1,)), ((), ())),
                                 preferred_element_type=jnp.float32)  # (2S, S)
            sc = jnp.where(future, jnp.float32(-1e30), sc)
            p = jnp.exp(sc - jnp.max(sc, axis=-1, keepdims=True))
            p = p / jnp.sum(p, axis=-1, keepdims=True)
            pv = jnp.dot(p, v_g, preferred_element_type=jnp.float32)   # (2S, d)

            # scatter the two heads into the lane-dense (S, B*H) output slab
            off = b * HIDDEN + h0 * HEAD_DIM
            for r in range(N_REP):
                slab_ref[:, off + r * HEAD_DIM:off + (r + 1) * HEAD_DIM] = (
                    pv[r * SEQ:(r + 1) * SEQ, :])

    # single fused o_proj for both batches via a block-diagonal weight
    o_ref[...] = jnp.dot(slab_ref[...], wo_bd,
                         preferred_element_type=jnp.float32)


_lfm2_call = pl.pallas_call(
    lfm2_attention_kernel,
    out_shape=jax.ShapeDtypeStruct((SEQ, BATCH * HIDDEN), jnp.float32),
    scratch_shapes=[pltpu.VMEM((SEQ, BATCH * HIDDEN), jnp.float32)],
)


@jax.jit
def lfm2_attention(x, consts):
    """Per-call hot path: reshape, one pallas_call, un-pack the lane layout."""
    x2 = x.reshape(BATCH * SEQ, HIDDEN)
    out_wide = _lfm2_call(x2, consts)                        # (S, B*H) lane-dense
    return jnp.transpose(out_wide.reshape(SEQ, BATCH, HIDDEN), (1, 0, 2))


def pack_constants(params, cos, sin):
    """One-time, init-time packing of every constant operand into a single
    lane-dense (480, 128) f32 slab.  Runs on the host in numpy; nothing here
    sits in the per-call jitted path."""
    wq = np.asarray(params["wq"], np.float32)
    wk = np.asarray(params["wk"], np.float32)
    wv = np.asarray(params["wv"], np.float32)
    wo = np.asarray(params["wo"], np.float32)
    q_ln = np.asarray(params["q_ln"], np.float32).reshape(HEAD_DIM)
    k_ln = np.asarray(params["k_ln"], np.float32).reshape(HEAD_DIM)
    cos = np.asarray(cos, np.float32)                        # (S, d)
    sin = np.asarray(sin, np.float32)

    inv_sqrt_d = 1.0 / math.sqrt(HEAD_DIM)
    # v lanes see rstd = rsqrt(0 + EPS) in the kernel; this factor undoes it.
    v_pass = 1.0 / float(jax.lax.rsqrt(jnp.float32(EPS)))

    # per-lane gain: q heads carry 1/sqrt(d), k heads carry k_ln, v lanes the
    # rsqrt(EPS) passthrough factor (consumed only through cos_g).
    gain = np.empty((QKV_DIM,), np.float32)
    for h in range(NUM_HEADS):
        gain[h * HEAD_DIM:(h + 1) * HEAD_DIM] = q_ln * inv_sqrt_d
    for g in range(NUM_KV_HEADS):
        gain[HIDDEN + g * HEAD_DIM:HIDDEN + (g + 1) * HEAD_DIM] = k_ln
    gain[HIDDEN + KV_DIM:] = v_pass

    # cos/sin broadcast to every q/k head; v lanes: cos=1 (x gain), sin=0
    cos_full = np.ones((SEQ, QKV_DIM), np.float32)
    sin_full = np.zeros((SEQ, QKV_DIM), np.float32)
    for h in range(NUM_HEADS + NUM_KV_HEADS):
        j0 = h * HEAD_DIM
        cos_full[:, j0:j0 + HEAD_DIM] = cos
        sin_full[:, j0:j0 + HEAD_DIM] = sin
    cos_g = np.tile(cos_full * gain[None, :], (BATCH, 1))    # (B*S, 128)
    sin_g = np.tile(sin_full, (BATCH, 1))                    # gain lives in rot_g

    # block-diag mean(x^2) broadcast matrix over q/k heads (zero for v lanes)
    starts = ([h * HEAD_DIM for h in range(NUM_HEADS)] +
              [HIDDEN + g * HEAD_DIM for g in range(NUM_KV_HEADS)])
    avg_mat = np.zeros((QKV_DIM, QKV_DIM), np.float32)
    for s0 in starts:
        avg_mat[s0:s0 + HEAD_DIM, s0:s0 + HEAD_DIM] = 1.0 / HEAD_DIM

    # signed block-permutation implementing rotate_half, rows scaled by gain
    # (i.e. diag(gain) @ rot: the gain is applied at the SOURCE lane).
    rot = np.zeros((QKV_DIM, QKV_DIM), np.float32)
    half = HEAD_DIM // 2
    for s0 in starts:
        for j in range(half):
            rot[s0 + half + j, s0 + j] = -1.0    # out[j]      = -in[j + d/2]
            rot[s0 + j, s0 + half + j] = 1.0     # out[j + d/2] =  in[j]
    rot_g = gain[:, None] * rot

    # fused QKV projection weight and per-batch block-diagonal o_proj weight
    wqkv = np.concatenate([wq, wk, wv], axis=1)              # (H, 128)
    wo_bd = np.zeros((BATCH * HIDDEN, BATCH * HIDDEN), np.float32)
    for b in range(BATCH):
        wo_bd[b * HIDDEN:(b + 1) * HIDDEN, b * HIDDEN:(b + 1) * HIDDEN] = wo

    consts = np.concatenate([wqkv, avg_mat, rot_g, cos_g, sin_g, wo_bd], axis=0)
    assert consts.shape == (R_TOT, QKV_DIM)
    return jnp.asarray(consts)


# ------------------- pure-JAX reference (mirrors the PyTorch module) -------------------
def _ref_rms(h, w):
    var = jnp.mean(h.astype(jnp.float32) ** 2, axis=-1, keepdims=True)
    return w * (h * lax.rsqrt(var + EPS))


def _ref_rotate_half(x):
    d = x.shape[-1]
    return jnp.concatenate([-x[..., d // 2:], x[..., : d // 2]], axis=-1)


def reference_attention(x, cos, sin, p):
    B, S, H = x.shape
    q = x @ p["wq"]
    k = x @ p["wk"]
    v = x @ p["wv"]
    q = _ref_rms(q.reshape(B, S, NUM_HEADS, HEAD_DIM), p["q_ln"][0]).transpose(0, 2, 1, 3)
    k = _ref_rms(k.reshape(B, S, NUM_KV_HEADS, HEAD_DIM), p["k_ln"][0]).transpose(0, 2, 1, 3)
    v = v.reshape(B, S, NUM_KV_HEADS, HEAD_DIM).transpose(0, 2, 1, 3)
    c = cos[None, None]
    s = sin[None, None]
    q = q * c + _ref_rotate_half(q) * s
    k = k * c + _ref_rotate_half(k) * s
    k = jnp.repeat(k, N_REP, axis=1)
    v = jnp.repeat(v, N_REP, axis=1)
    scores = jnp.einsum("bhqd,bhkd->bhqk", q, k) / math.sqrt(HEAD_DIM)
    causal = jnp.triu(jnp.full((S, S), -jnp.inf, dtype=jnp.float32), k=1)
    w = jax.nn.softmax(scores.astype(jnp.float32) + causal, axis=-1)
    attn = jnp.einsum("bhqk,bhkd->bhqd", w, v)
    return attn.transpose(0, 2, 1, 3).reshape(B, S, H) @ p["wo"]


def make_rope(seq_len, head_dim, theta=ROPE_THETA):
    inv_freq = 1.0 / (theta ** (jnp.arange(0, head_dim, 2, dtype=jnp.float32) / head_dim))
    freqs = jnp.outer(jnp.arange(seq_len, dtype=jnp.float32), inv_freq)
    emb = jnp.concatenate([freqs, freqs], axis=-1)
    return jnp.cos(emb), jnp.sin(emb)


if __name__ == "__main__":
    key = jax.random.PRNGKey(0)
    keys = jax.random.split(key, 7)

    x = jax.random.normal(keys[0], (BATCH, SEQ, HIDDEN), dtype=jnp.float32)

    def w(k, shape):
        return 0.02 * jax.random.normal(k, shape, dtype=jnp.float32)

    params = {
        # projection weights stored (in_features, out_features): x @ w == nn.Linear(x)
        "wq": w(keys[1], (HIDDEN, HIDDEN)),
        "wk": w(keys[2], (HIDDEN, KV_DIM)),
        "wv": w(keys[3], (HIDDEN, KV_DIM)),
        "wo": w(keys[4], (HIDDEN, HIDDEN)),
        "q_ln": 1.0 + 0.1 * jax.random.normal(keys[5], (1, HEAD_DIM), dtype=jnp.float32),
        "k_ln": 1.0 + 0.1 * jax.random.normal(keys[6], (1, HEAD_DIM), dtype=jnp.float32),
    }

    cos, sin = make_rope(SEQ, HEAD_DIM)

    # one-time, init-time packing of all constants (outside the hot path)
    consts = pack_constants(params, cos, sin)

    out = jax.block_until_ready(lfm2_attention(x, consts))
    ref = jax.block_until_ready(reference_attention(x, cos, sin, params))

    np.testing.assert_allclose(np.asarray(out), np.asarray(ref), rtol=1e-2, atol=1e-5)
    print("KERNEL_OK")
</pallas_src>

<mosaic_0001>
module attributes {stable_mosaic.version = 11 : i64} {
  func.func @lfm2_attention_kernel(%arg0: memref<16x64xf32, #tpu.memory_space<vmem>>, %arg1: memref<480x128xf32, #tpu.memory_space<vmem>>, %arg2: memref<8x128xf32, #tpu.memory_space<vmem>>, %arg3: memref<8x128xf32, #tpu.memory_space<vmem>>) attributes {dimension_semantics = [], scalar_prefetch = 0 : i64, scratch_operands = 1 : i64, tpu.core_type = #tpu.core_type<tc>} {
    %c0 = arith.constant 0 : index
    %c0_0 = arith.constant 0 : index
    %0 = vector.load %arg0[%c0, %c0_0] : memref<16x64xf32, #tpu.memory_space<vmem>>, vector<16x64xf32>
    %c0_1 = arith.constant 0 : index
    %c0_2 = arith.constant 0 : index
    %1 = vector.load %arg1[%c0_1, %c0_2] : memref<480x128xf32, #tpu.memory_space<vmem>>, vector<64x128xf32>
    %c64 = arith.constant 64 : index
    %c0_3 = arith.constant 0 : index
    %2 = vector.load %arg1[%c64, %c0_3] : memref<480x128xf32, #tpu.memory_space<vmem>>, vector<128x128xf32>
    %c192 = arith.constant 192 : index
    %c0_4 = arith.constant 0 : index
    %3 = vector.load %arg1[%c192, %c0_4] : memref<480x128xf32, #tpu.memory_space<vmem>>, vector<128x128xf32>
    %c320 = arith.constant 320 : index
    %c0_5 = arith.constant 0 : index
    %4 = vector.load %arg1[%c320, %c0_5] : memref<480x128xf32, #tpu.memory_space<vmem>>, vector<16x128xf32>
    %c336 = arith.constant 336 : index
    %c0_6 = arith.constant 0 : index
    %5 = vector.load %arg1[%c336, %c0_6] : memref<480x128xf32, #tpu.memory_space<vmem>>, vector<16x128xf32>
    %c352 = arith.constant 352 : index
    %c0_7 = arith.constant 0 : index
    %6 = vector.load %arg1[%c352, %c0_7] : memref<480x128xf32, #tpu.memory_space<vmem>>, vector<128x128xf32>
    %cst = arith.constant dense<0.000000e+00> : vector<16x128xf32>
    %7 = tpu.matmul %0, %1, %cst {dimension_numbers = #tpu.dot_dimension_numbers<[1], [0], [0], [1], [0, 0, 1, 1], [], []>} : vector<16x64xf32>, vector<64x128xf32>, vector<16x128xf32> -> vector<16x128xf32>
    %8 = arith.mulf %7, %7 : vector<16x128xf32>
    %cst_8 = arith.constant dense<0.000000e+00> : vector<16x128xf32>
    %9 = tpu.matmul %8, %2, %cst_8 {dimension_numbers = #tpu.dot_dimension_numbers<[1], [0], [0], [1], [0, 0, 1, 1], [], []>} : vector<16x128xf32>, vector<128x128xf32>, vector<16x128xf32> -> vector<16x128xf32>
    %cst_9 = arith.constant 9.99999997E-7 : f32
    %10 = vector.broadcast %cst_9 : f32 to vector<16x128xf32>
    %11 = arith.addf %9, %10 : vector<16x128xf32>
    %12 = math.rsqrt %11 : vector<16x128xf32>
    %13 = arith.mulf %7, %12 : vector<16x128xf32>
    %14 = arith.mulf %13, %4 : vector<16x128xf32>
    %cst_10 = arith.constant dense<0.000000e+00> : vector<16x128xf32>
    %15 = tpu.matmul %13, %3, %cst_10 {dimension_numbers = #tpu.dot_dimension_numbers<[1], [0], [0], [1], [0, 0, 1, 1], [], []>} : vector<16x128xf32>, vector<128x128xf32>, vector<16x128xf32> -> vector<16x128xf32>
    %16 = arith.mulf %15, %5 : vector<16x128xf32>
    %17 = arith.addf %14, %16 : vector<16x128xf32>
    %18 = tpu.iota {dimensions = array<i32: 0>} : vector<16x8xi32>
    %19 = tpu.iota {dimensions = array<i32: 1>} : vector<16x8xi32>
    %c7_i32 = arith.constant 7 : i32
    %20 = vector.broadcast %c7_i32 : i32 to vector<16x8xi32>
    %21 = arith.andi %18, %20 : vector<16x8xi32>
    %22 = arith.cmpi sgt, %19, %21 : vector<16x8xi32>
    %23 = vector.extract_strided_slice %17 {offsets = [0, 0], sizes = [8, 16], strides = [1, 1]} : vector<16x128xf32> to vector<8x16xf32>
    %24 = vector.extract_strided_slice %17 {offsets = [0, 16], sizes = [8, 16], strides = [1, 1]} : vector<16x128xf32> to vector<8x16xf32>
    %25 = tpu.concatenate %23, %24 in 0 : vector<8x16xf32>, vector<8x16xf32> -> vector<16x16xf32>
    %26 = vector.extract_strided_slice %17 {offsets = [0, 64], sizes = [8, 16], strides = [1, 1]} : vector<16x128xf32> to vector<8x16xf32>
    %27 = vector.extract_strided_slice %17 {offsets = [0, 96], sizes = [8, 16], strides = [1, 1]} : vector<16x128xf32> to vector<8x16xf32>
    %cst_11 = arith.constant dense<0.000000e+00> : vector<16x8xf32>
    %28 = tpu.matmul %25, %26, %cst_11 {dimension_numbers = #tpu.dot_dimension_numbers<[1], [1], [0], [0], [0, 0, 1, 0], [], []>} : vector<16x16xf32>, vector<8x16xf32>, vector<16x8xf32> -> vector<16x8xf32>
    %cst_12 = arith.constant -1.000000e+30 : f32
    %29 = vector.broadcast %cst_12 : f32 to vector<16x8xf32>
    %30 = arith.select %22, %29, %28 : vector<16x8xi1>, vector<16x8xf32>
    %cst_13 = arith.constant dense<0xFF800000> : vector<16xf32>
    %31 = vector.multi_reduction <maximumf>, %30, %cst_13 [1] : vector<16x8xf32> to vector<16xf32>
    %32 = vector.shape_cast %31 : vector<16xf32> to vector<16x1xf32>
    %33 = vector.broadcast %32 : vector<16x1xf32> to vector<16x8xf32>
    %34 = arith.subf %30, %33 : vector<16x8xf32>
    %35 = math.exp %34 : vector<16x8xf32>
    %cst_14 = arith.constant dense<0.000000e+00> : vector<16xf32>
    %36 = vector.multi_reduction <add>, %35, %cst_14 [1] : vector<16x8xf32> to vector<16xf32>
    %37 = vector.shape_cast %36 : vector<16xf32> to vector<16x1xf32>
    %38 = vector.broadcast %37 : vector<16x1xf32> to vector<16x8xf32>
    %39 = arith.divf %35, %38 : vector<16x8xf32>
    %cst_15 = arith.constant dense<0.000000e+00> : vector<16x16xf32>
    %40 = tpu.matmul %39, %27, %cst_15 {dimension_numbers = #tpu.dot_dimension_numbers<[1], [0], [0], [1], [0, 0, 1, 1], [], []>} : vector<16x8xf32>, vector<8x16xf32>, vector<16x16xf32> -> vector<16x16xf32>
    %41 = vector.extract_strided_slice %40 {offsets = [0, 0], sizes = [8, 16], strides = [1, 1]} : vector<16x16xf32> to vector<8x16xf32>
    %c0_16 = arith.constant 0 : index
    %c0_17 = arith.constant 0 : index
    %42 = vector.load %arg3[%c0_16, %c0_17] : memref<8x128xf32, #tpu.memory_space<vmem>>, vector<8x16xf32>
    tpu.vector_store %arg3[%c0_16, %c0_17], %41 {strides = array<i32>} : memref<8x128xf32, #tpu.memory_space<vmem>>, vector<8x16xf32>,
    %43 = vector.extract_strided_slice %40 {offsets = [8, 0], sizes = [8, 16], strides = [1, 1]} : vector<16x16xf32> to vector<8x16xf32>
    %c0_18 = arith.constant 0 : index
    %c16 = arith.constant 16 : index
    %44 = vector.load %arg3[%c0_18, %c16] : memref<8x128xf32, #tpu.memory_space<vmem>>, vector<8x16xf32>
    tpu.vector_store %arg3[%c0_18, %c16], %43 {strides = array<i32>} : memref<8x128xf32, #tpu.memory_space<vmem>>, vector<8x16xf32>,
    %45 = vector.extract_strided_slice %17 {offsets = [0, 32], sizes = [8, 16], strides = [1, 1]} : vector<16x128xf32> to vector<8x16xf32>
    %46 = vector.extract_strided_slice %17 {offsets = [0, 48], sizes = [8, 16], strides = [1, 1]} : vector<16x128xf32> to vector<8x16xf32>
    %47 = tpu.concatenate %45, %46 in 0 : vector<8x16xf32>, vector<8x16xf32> -> vector<16x16xf32>
    %48 = vector.extract_strided_slice %17 {offsets = [0, 80], sizes = [8, 16], strides = [1, 1]} : vector<16x128xf32> to vector<8x16xf32>
    %49 = vector.extract_strided_slice %17 {offsets = [0, 112], sizes = [8, 16], strides = [1, 1]} : vector<16x128xf32> to vector<8x16xf32>
    %cst_19 = arith.constant dense<0.000000e+00> : vector<16x8xf32>
    %50 = tpu.matmul %47, %48, %cst_19 {dimension_numbers = #tpu.dot_dimension_numbers<[1], [1], [0], [0], [0, 0, 1, 0], [], []>} : vector<16x16xf32>, vector<8x16xf32>, vector<16x8xf32> -> vector<16x8xf32>
    %cst_20 = arith.constant -1.000000e+30 : f32
    %51 = vector.broadcast %cst_20 : f32 to vector<16x8xf32>
    %52 = arith.select %22, %51, %50 : vector<16x8xi1>, vector<16x8xf32>
    %cst_21 = arith.constant dense<0xFF800000> : vector<16xf32>
    %53 = vector.multi_reduction <maximumf>, %52, %cst_21 [1] : vector<16x8xf32> to vector<16xf32>
    %54 = vector.shape_cast %53 : vector<16xf32> to vector<16x1xf32>
    %55 = vector.broadcast %54 : vector<16x1xf32> to vector<16x8xf32>
    %56 = arith.subf %52, %55 : vector<16x8xf32>
    %57 = math.exp %56 : vector<16x8xf32>
    %cst_22 = arith.constant dense<0.000000e+00> : vector<16xf32>
    %58 = vector.multi_reduction <add>, %57, %cst_22 [1] : vector<16x8xf32> to vector<16xf32>
    %59 = vector.shape_cast %58 : vector<16xf32> to vector<16x1xf32>
    %60 = vector.broadcast %59 : vector<16x1xf32> to vector<16x8xf32>
    %61 = arith.divf %57, %60 : vector<16x8xf32>
    %cst_23 = arith.constant dense<0.000000e+00> : vector<16x16xf32>
    %62 = tpu.matmul %61, %49, %cst_23 {dimension_numbers = #tpu.dot_dimension_numbers<[1], [0], [0], [1], [0, 0, 1, 1], [], []>} : vector<16x8xf32>, vector<8x16xf32>, vector<16x16xf32> -> vector<16x16xf32>
    %63 = vector.extract_strided_slice %62 {offsets = [0, 0], sizes = [8, 16], strides = [1, 1]} : vector<16x16xf32> to vector<8x16xf32>
    %c0_24 = arith.constant 0 : index
    %c32 = arith.constant 32 : index
    %64 = vector.load %arg3[%c0_24, %c32] : memref<8x128xf32, #tpu.memory_space<vmem>>, vector<8x16xf32>
    tpu.vector_store %arg3[%c0_24, %c32], %63 {strides = array<i32>} : memref<8x128xf32, #tpu.memory_space<vmem>>, vector<8x16xf32>,
    %65 = vector.extract_strided_slice %62 {offsets = [8, 0], sizes = [8, 16], strides = [1, 1]} : vector<16x16xf32> to vector<8x16xf32>
    %c0_25 = arith.constant 0 : index
    %c48 = arith.constant 48 : index
    %66 = vector.load %arg3[%c0_25, %c48] : memref<8x128xf32, #tpu.memory_space<vmem>>, vector<8x16xf32>
    tpu.vector_store %arg3[%c0_25, %c48], %65 {strides = array<i32>} : memref<8x128xf32, #tpu.memory_space<vmem>>, vector<8x16xf32>,
    %67 = vector.extract_strided_slice %17 {offsets = [8, 0], sizes = [8, 16], strides = [1, 1]} : vector<16x128xf32> to vector<8x16xf32>
    %68 = vector.extract_strided_slice %17 {offsets = [8, 16], sizes = [8, 16], strides = [1, 1]} : vector<16x128xf32> to vector<8x16xf32>
    %69 = tpu.concatenate %67, %68 in 0 : vector<8x16xf32>, vector<8x16xf32> -> vector<16x16xf32>
    %70 = vector.extract_strided_slice %17 {offsets = [8, 64], sizes = [8, 16], strides = [1, 1]} : vector<16x128xf32> to vector<8x16xf32>
    %71 = vector.extract_strided_slice %17 {offsets = [8, 96], sizes = [8, 16], strides = [1, 1]} : vector<16x128xf32> to vector<8x16xf32>
    %cst_26 = arith.constant dense<0.000000e+00> : vector<16x8xf32>
    %72 = tpu.matmul %69, %70, %cst_26 {dimension_numbers = #tpu.dot_dimension_numbers<[1], [1], [0], [0], [0, 0, 1, 0], [], []>} : vector<16x16xf32>, vector<8x16xf32>, vector<16x8xf32> -> vector<16x8xf32>
    %cst_27 = arith.constant -1.000000e+30 : f32
    %73 = vector.broadcast %cst_27 : f32 to vector<16x8xf32>
    %74 = arith.select %22, %73, %72 : vector<16x8xi1>, vector<16x8xf32>
    %cst_28 = arith.constant dense<0xFF800000> : vector<16xf32>
    %75 = vector.multi_reduction <maximumf>, %74, %cst_28 [1] : vector<16x8xf32> to vector<16xf32>
    %76 = vector.shape_cast %75 : vector<16xf32> to vector<16x1xf32>
    %77 = vector.broadcast %76 : vector<16x1xf32> to vector<16x8xf32>
    %78 = arith.subf %74, %77 : vector<16x8xf32>
    %79 = math.exp %78 : vector<16x8xf32>
    %cst_29 = arith.constant dense<0.000000e+00> : vector<16xf32>
    %80 = vector.multi_reduction <add>, %79, %cst_29 [1] : vector<16x8xf32> to vector<16xf32>
    %81 = vector.shape_cast %80 : vector<16xf32> to vector<16x1xf32>
    %82 = vector.broadcast %81 : vector<16x1xf32> to vector<16x8xf32>
    %83 = arith.divf %79, %82 : vector<16x8xf32>
    %cst_30 = arith.constant dense<0.000000e+00> : vector<16x16xf32>
    %84 = tpu.matmul %83, %71, %cst_30 {dimension_numbers = #tpu.dot_dimension_numbers<[1], [0], [0], [1], [0, 0, 1, 1], [], []>} : vector<16x8xf32>, vector<8x16xf32>, vector<16x16xf32> -> vector<16x16xf32>
    %85 = vector.extract_strided_slice %84 {offsets = [0, 0], sizes = [8, 16], strides = [1, 1]} : vector<16x16xf32> to vector<8x16xf32>
    %c0_31 = arith.constant 0 : index
    %c64_32 = arith.constant 64 : index
    %86 = vector.load %arg3[%c0_31, %c64_32] : memref<8x128xf32, #tpu.memory_space<vmem>>, vector<8x16xf32>
    tpu.vector_store %arg3[%c0_31, %c64_32], %85 {strides = array<i32>} : memref<8x128xf32, #tpu.memory_space<vmem>>, vector<8x16xf32>,
    %87 = vector.extract_strided_slice %84 {offsets = [8, 0], sizes = [8, 16], strides = [1, 1]} : vector<16x16xf32> to vector<8x16xf32>
    %c0_33 = arith.constant 0 : index
    %c80 = arith.constant 80 : index
    %88 = vector.load %arg3[%c0_33, %c80] : memref<8x128xf32, #tpu.memory_space<vmem>>, vector<8x16xf32>
    tpu.vector_store %arg3[%c0_33, %c80], %87 {strides = array<i32>} : memref<8x128xf32, #tpu.memory_space<vmem>>, vector<8x16xf32>,
    %89 = vector.extract_strided_slice %17 {offsets = [8, 32], sizes = [8, 16], strides = [1, 1]} : vector<16x128xf32> to vector<8x16xf32>
    %90 = vector.extract_strided_slice %17 {offsets = [8, 48], sizes = [8, 16], strides = [1, 1]} : vector<16x128xf32> to vector<8x16xf32>
    %91 = tpu.concatenate %89, %90 in 0 : vector<8x16xf32>, vector<8x16xf32> -> vector<16x16xf32>
    %92 = vector.extract_strided_slice %17 {offsets = [8, 80], sizes = [8, 16], strides = [1, 1]} : vector<16x128xf32> to vector<8x16xf32>
    %93 = vector.extract_strided_slice %17 {offsets = [8, 112], sizes = [8, 16], strides = [1, 1]} : vector<16x128xf32> to vector<8x16xf32>
    %cst_34 = arith.constant dense<0.000000e+00> : vector<16x8xf32>
    %94 = tpu.matmul %91, %92, %cst_34 {dimension_numbers = #tpu.dot_dimension_numbers<[1], [1], [0], [0], [0, 0, 1, 0], [], []>} : vector<16x16xf32>, vector<8x16xf32>, vector<16x8xf32> -> vector<16x8xf32>
    %cst_35 = arith.constant -1.000000e+30 : f32
    %95 = vector.broadcast %cst_35 : f32 to vector<16x8xf32>
    %96 = arith.select %22, %95, %94 : vector<16x8xi1>, vector<16x8xf32>
    %cst_36 = arith.constant dense<0xFF800000> : vector<16xf32>
    %97 = vector.multi_reduction <maximumf>, %96, %cst_36 [1] : vector<16x8xf32> to vector<16xf32>
    %98 = vector.shape_cast %97 : vector<16xf32> to vector<16x1xf32>
    %99 = vector.broadcast %98 : vector<16x1xf32> to vector<16x8xf32>
    %100 = arith.subf %96, %99 : vector<16x8xf32>
    %101 = math.exp %100 : vector<16x8xf32>
    %cst_37 = arith.constant dense<0.000000e+00> : vector<16xf32>
    %102 = vector.multi_reduction <add>, %101, %cst_37 [1] : vector<16x8xf32> to vector<16xf32>
    %103 = vector.shape_cast %102 : vector<16xf32> to vector<16x1xf32>
    %104 = vector.broadcast %103 : vector<16x1xf32> to vector<16x8xf32>
    %105 = arith.divf %101, %104 : vector<16x8xf32>
    %cst_38 = arith.constant dense<0.000000e+00> : vector<16x16xf32>
    %106 = tpu.matmul %105, %93, %cst_38 {dimension_numbers = #tpu.dot_dimension_numbers<[1], [0], [0], [1], [0, 0, 1, 1], [], []>} : vector<16x8xf32>, vector<8x16xf32>, vector<16x16xf32> -> vector<16x16xf32>
    %107 = vector.extract_strided_slice %106 {offsets = [0, 0], sizes = [8, 16], strides = [1, 1]} : vector<16x16xf32> to vector<8x16xf32>
    %c0_39 = arith.constant 0 : index
    %c96 = arith.constant 96 : index
    %108 = vector.load %arg3[%c0_39, %c96] : memref<8x128xf32, #tpu.memory_space<vmem>>, vector<8x16xf32>
    tpu.vector_store %arg3[%c0_39, %c96], %107 {strides = array<i32>} : memref<8x128xf32, #tpu.memory_space<vmem>>, vector<8x16xf32>,
    %109 = vector.extract_strided_slice %106 {offsets = [8, 0], sizes = [8, 16], strides = [1, 1]} : vector<16x16xf32> to vector<8x16xf32>
    %c0_40 = arith.constant 0 : index
    %c112 = arith.constant 112 : index
    %110 = vector.load %arg3[%c0_40, %c112] : memref<8x128xf32, #tpu.memory_space<vmem>>, vector<8x16xf32>
    tpu.vector_store %arg3[%c0_40, %c112], %109 {strides = array<i32>} : memref<8x128xf32, #tpu.memory_space<vmem>>, vector<8x16xf32>,
    %c0_41 = arith.constant 0 : index
    %c0_42 = arith.constant 0 : index
    %111 = vector.load %arg3[%c0_41, %c0_42] : memref<8x128xf32, #tpu.memory_space<vmem>>, vector<8x128xf32>
    %cst_43 = arith.constant dense<0.000000e+00> : vector<8x128xf32>
    %112 = tpu.matmul %111, %6, %cst_43 {dimension_numbers = #tpu.dot_dimension_numbers<[1], [0], [0], [1], [0, 0, 1, 1], [], []>} : vector<8x128xf32>, vector<128x128xf32>, vector<8x128xf32> -> vector<8x128xf32>
    %c0_44 = arith.constant 0 : index
    %c0_45 = arith.constant 0 : index
    %113 = vector.load %arg2[%c0_44, %c0_45] : memref<8x128xf32, #tpu.memory_space<vmem>>, vector<8x128xf32>
    tpu.vector_store %arg2[%c0_44, %c0_45], %112 {strides = array<i32>} : memref<8x128xf32, #tpu.memory_space<vmem>>, vector<8x128xf32>,
    return
  }
}

</mosaic_0001>

<bundles_post_ra>
// kernel: lfm2_attention.1
= control target key start
LH: loop header
LB: loop body
LE: loop exit
PB: predicated region body
PF: predicated region fallthrough
CT: control target
= control target key end

     0   :  { %7 = vsyncpa [#allocation4], 0  ;;  %s1891_s0 = inlined_call_operand.hbm [shape: f32[16,64], index: 0, kind: input, shape index: {}]   ;;  %s1892_s1 = inlined_call_operand.hbm [shape: f32[480,128], index: 1, kind: input, shape index: {}]   ;;  %s1893_s2 = inlined_call_operand.vmem [shape: f32[8,128], index: 2, kind: output, shape index: {}]  }
   0x1   :  { %8 = vsyncpa [#allocation6], 0  ;;  %s1730_s9 = smov [#allocation3]   ;;  %s1682_s13 = scalar_lea.hbm %s1891_s0, 256 }
   0x2   :  { %s14_s10 = sshll.u32 %s1730_s9, 4  ;;  %p1683_p0 = scmp.ne.s32.totalorder %s1891_s0, %s1682_s13  ;;  %s15_s10 = int_to_ptr.vmem [resolvable:$true] %s14_s10 }
   0x3   :  { %p1686_p1 = scmp.lt.u32.totalorder %s1682_s13, %s1891_s0 }
   0x5   :  { %p1688_p2 = pnand %p1686_p1, %p1683_p0 }
   0x7   :  { %1691 = shalt.err (!%p1688_p2)
}
   0x8   :  { %s1692_s18 = scalar_lea.vmem %s15_s10, 256  ;;  %p1697_p4 = scmp.lt.s32.totalorder %s15_s10, %s15_s10 }
   0x9   :  { %p1693_p3 = scmp.ne.s32.totalorder %s15_s10, %s1692_s18  ;;  %p1698_p5 = scmp.lt.s32.totalorder %s1692_s18, %s1692_s18 }
   0xb   :  { %p1699_p6 = por %p1698_p5, %p1697_p4 }
   0xd   :  { %p1700_p7 = pnand %p1699_p6, %p1693_p3 }
   0xf   :  { %1703 = shalt.err (!%p1700_p7)
}
  0x10   :  { %s1731_s19 = smov 128   ;;  %s1732_s20 = smov 8  }
  0x11   :  { %20 = dma.hbm_to_vmem [thread:$0]  %s1891_s0, 256, %s15_s10, [#allocation4], %s1731_s19, %s1731_s19, %s1732_s20  }
  0x12   :  { %s1733_s23 = smov [#allocation5]   ;;  %s1704_s27 = scalar_lea.hbm %s1892_s1, 7680 }
  0x13   :  { %s26_s24 = sshll.u32 %s1733_s23, 4  ;;  %p1705_p8 = scmp.ne.s32.totalorder %s1892_s1, %s1704_s27  ;;  %s27_s24 = int_to_ptr.vmem [resolvable:$true] %s26_s24 }
  0x14   :  { %p1708_p9 = scmp.lt.u32.totalorder %s1704_s27, %s1892_s1 }
  0x16   :  { %p1710_p10 = pnand %p1708_p9, %p1705_p8 }
  0x18   :  { %1713 = shalt.err (!%p1710_p10)
}
  0x19   :  { %s1714_s4 = scalar_lea.vmem %s27_s24, 7680  ;;  %p1719_p12 = scmp.lt.s32.totalorder %s27_s24, %s27_s24 }
  0x1a   :  { %p1715_p11 = scmp.ne.s32.totalorder %s27_s24, %s1714_s4  ;;  %p1720_p13 = scmp.lt.s32.totalorder %s1714_s4, %s1714_s4 }
  0x1c   :  { %p1721_p0 = por %p1720_p13, %p1719_p12 }
  0x1e   :  { %p1722_p1 = pnand %p1721_p0, %p1715_p11 }
  0x20   :  { %1725 = shalt.err (!%p1722_p1)
}
  0x21   :  { %32 = dma.hbm_to_vmem [thread:$0]  %s1892_s1, 7680, %s27_s24, [#allocation6], %s1731_s19, %s1731_s19, %s1732_s20  }
  0x22   :  { %1726 = dma.done.wait [#allocation4], 256  }
  0x23   :  { %1727 = vsyncadd [#allocation4], 4294967040 }
  0x24   :  { %1728 = dma.done.wait [#allocation6], 7680  }
  0x25   :  { %1729 = vsyncadd [#allocation6], 4294959616  ;;  %v41_v0 = vld [vmem:[#allocation5] sm:$0xff]  ;;  %v42_v1 = vld [vmem:[#allocation5 + $0x8] sm:$0xff]  ;;  %vm101_vm0 = vcmask 523264   ;;  %vm359_vm1 = vcmask 130048  }
  0x26   :  { %v43_v2 = vld [vmem:[#allocation5 + $0x10] sm:$0xff]  ;;  %v1528_v3 = vpack.c.bf16 %v42_v1, %v41_v0  ;;  %v44_v4 = vld [vmem:[#allocation5 + $0x18] sm:$0xff]  ;;  %v45_v6 = vld [vmem:[#allocation5 + $0x20] sm:$0xff]  ;;  %s1734_s1 = smov 64   ;;  %s1735_s6 = smov 112   ;;  %vm443_vm3 = vcmask 64512  }
  0x27   :  { %v1532_v5 = vpack.c.bf16 %v44_v4, %v43_v2  ;;  %v46_v7 = vld [vmem:[#allocation5 + $0x28] sm:$0xff]  ;;  %v39_v8 = vld [vmem:[#allocation3] sm:$0xff]  ;;  %v48_v11 = vld [vmem:[#allocation5 + $0x38] sm:$0xff]  ;;  %s1736_s7 = smov 32   ;;  %s1737_s8 = smov 48   ;;  %vm555_vm5 = vcmask 261248  }
  0x28   :  { %1529 = vmatprep.subr.bf16.mxu1 %v1528_v3  ;;  %1380 = vmatprep.mubr.msk.f32.mxu1 %vm101_vm0, %v39_v8  ;;  %v1536_v9 = vpack.c.bf16 %v46_v7, %v45_v6  ;;  %v47_v10 = vld [vmem:[#allocation5 + $0x30] sm:$0xff]  ;;  %v49_v13 = vld [vmem:[#allocation5 + $0x40] sm:$0xff]  ;;  %v50_v14 = vld [vmem:[#allocation5 + $0x48] sm:$0xff]  ;;  %s1738_s9 = smov 96   ;;  %s1739_s10 = smov 16   ;;  %vm1741_vm6 = vmmov 0  }
  0x29   :  { %1531 = vmatpush3.bf16.msra.mxu1 %v1528_v3  ;;  %v1540_v12 = vpack.c.bf16 %v48_v11, %v47_v10  ;;  %v1544_v15 = vpack.c.bf16 %v50_v14, %v49_v13  ;;  %v51_v16 = vld [vmem:[#allocation5 + $0x50] sm:$0xff]  ;;  %v52_v17 = vld [vmem:[#allocation5 + $0x58] sm:$0xff]  ;;  %v53_v20 = vld [vmem:[#allocation5 + $0x60] sm:$0xff]  ;;  %s1743_s11 = smov 80   ;;  %vm756_vm7 = vcmask 392448   ;;  %vm762_vm8 = vcmask 523648  }
  0x2a   :  { %1533 = vmatprep.subr.bf16.mxu1 %v1532_v5  ;;  %v40_v18 = vld [vmem:[#allocation3 + $0x8] sm:$0xff]  ;;  %v1548_v19 = vpack.c.bf16 %v52_v17, %v51_v16  ;;  %v54_v21 = vld [vmem:[#allocation5 + $0x68] sm:$0xff]  ;;  %v55_v23 = vld [vmem:[#allocation5 + $0x70] sm:$0xff]  ;;  %vm962_vm9 = vcmask 654848   ;;  %vm968_vm10 = vcmask 786048   ;;  %vm1169_vm11 = vcmask 917248  }
  0x2b   :  { %v1552_v22 = vpack.c.bf16 %v54_v21, %v53_v20  ;;  %v56_v24 = vld [vmem:[#allocation5 + $0x78] sm:$0xff]  ;;  %v57_v26 = vld [vmem:[#allocation5 + $0x80] sm:$0xff]  ;;  %v58_v27 = vld [vmem:[#allocation5 + $0x88] sm:$0xff]  ;;  %vm1175_vm12 = vcmask 1048448  }
  0x2c   :  { %v1556_v25 = vpack.c.bf16 %v56_v24, %v55_v23  ;;  %v1560_v28 = vpack.c.bf16 %v58_v27, %v57_v26  ;;  %v59_v29 = vld [vmem:[#allocation5 + $0x90] sm:$0xff]  ;;  %v60_v30 = vld [vmem:[#allocation5 + $0x98] sm:$0xff]  ;;  %v61_v32 = vld [vmem:[#allocation5 + $0xa0] sm:$0xff]  ;;  %v345_v24 = vlaneseq }
  0x2d   :  { %1535 = vmatpush3.bf16.msra.mxu1 %v1532_v5  ;;  %v1564_v31 = vpack.c.bf16 %v60_v30, %v59_v29  ;;  %v62_v33 = vld [vmem:[#allocation5 + $0xa8] sm:$0xff]  ;;  %v63_v35 = vld [vmem:[#allocation5 + $0xb0] sm:$0xff]  ;;  %v64_v36 = vld [vmem:[#allocation5 + $0xb8] sm:$0xff] }
  0x2e   :  { %1537 = vmatprep.subr.bf16.mxu1 %v1536_v9  ;;  %v1568_v34 = vpack.c.bf16 %v62_v33, %v61_v32  ;;  %v1572_v37 = vpack.c.bf16 %v64_v36, %v63_v35  ;;  %v65_v38 = vld [vmem:[#allocation5 + $0xc0] sm:$0xff]  ;;  %v66_v39 = vld [vmem:[#allocation5 + $0xc8] sm:$0xff]  ;;  %v67_v40 = vld [vmem:[#allocation5 + $0xd0] sm:$0xff]  ;;  %v349_v27 = vand.u32 127, %v345_v24 }
  0x2f   :  { %v1576_v41 = vpack.c.bf16 %v66_v39, %v65_v38  ;;  %v68_v42 = vld [vmem:[#allocation5 + $0xd8] sm:$0xff]  ;;  %v69_v44 = vld [vmem:[#allocation5 + $0xe0] sm:$0xff]  ;;  %v70_v45 = vld [vmem:[#allocation5 + $0xe8] sm:$0xff] }
  0x30   :  { %v1580_v43 = vpack.c.bf16 %v68_v42, %v67_v40  ;;  %v1584_v46 = vpack.c.bf16 %v70_v45, %v69_v44  ;;  %v71_v47 = vld [vmem:[#allocation5 + $0xf0] sm:$0xff]  ;;  %v72_v48 = vld [vmem:[#allocation5 + $0xf8] sm:$0xff]  ;;  %v73_v54 = vld [vmem:[#allocation5 + $0x100] sm:$0xff] }
  0x31   :  { %1539 = vmatpush3.bf16.msra.mxu1 %v1536_v9  ;;  %1577 = vmatprep.subr.bf16.mxu0 %v1576_v41  ;;  %v1588_v49 = vpack.c.bf16 %v72_v48, %v71_v47  ;;  %v74_v55 = vld [vmem:[#allocation5 + $0x108] sm:$0xff]  ;;  %v75_v57 = vld [vmem:[#allocation5 + $0x110] sm:$0xff]  ;;  %v76_v58 = vld [vmem:[#allocation5 + $0x118] sm:$0xff] }
  0x32   :  { %1541 = vmatprep.subr.bf16.mxu1 %v1540_v12  ;;  %1579 = vmatpush3.bf16.msra.mxu0 %v1576_v41  ;;  %v1592_v56 = vpack.c.bf16 %v74_v55, %v73_v54  ;;  %v1596_v59 = vpack.c.bf16 %v76_v58, %v75_v57  ;;  %v77_v60 = vld [vmem:[#allocation5 + $0x120] sm:$0xff]  ;;  %v78_v61 = vld [vmem:[#allocation5 + $0x128] sm:$0xff]  ;;  %v79_v63 = vld [vmem:[#allocation5 + $0x130] sm:$0xff] }
  0x33   :  { %1581 = vmatprep.subr.bf16.mxu0 %v1580_v43  ;;  %v1600_v62 = vpack.c.bf16 %v78_v61, %v77_v60  ;;  %v80_v0 = vld [vmem:[#allocation5 + $0x138] sm:$0xff]  ;;  %v82_v10 = vld [vmem:[#allocation5 + $0x148] sm:$0xff]  ;;  %v83_v13 = vld [vmem:[#allocation5 + $0x150] sm:$0xff] }
  0x34   :  { %v1604_v1 = vpack.c.bf16 %v80_v0, %v79_v63  ;;  %v84_v11 = vld [vmem:[#allocation5 + $0x158] sm:$0xff] }
  0x35   :  { %1543 = vmatpush3.bf16.msra.mxu1 %v1540_v12  ;;  %v81_v12 = vld [vmem:[#allocation5 + $0x140] sm:$0xff] }
  0x36   :  { %1545 = vmatprep.subr.bf16.mxu1 %v1544_v15  ;;  %1583 = vmatpush3.bf16.msra.mxu0 %v1580_v43 }
  0x37   :  { %1585 = vmatprep.subr.bf16.mxu0 %v1584_v46 }
  0x38   :  { %1381 = vmatmul.mubr.msk.f32.vlgmr.msra.gmra.mrb[0].mxu1 %vm101_vm0, %v40_v18 }
  0x39   :  { %1547 = vmatpush3.bf16.msra.mxu1 %v1544_v15 }
  0x3a   :  { %1549 = vmatprep.subr.bf16.mxu1 %v1548_v19  ;;  %1587 = vmatpush3.bf16.msra.mxu0 %v1584_v46 }
  0x3b   :  { %1589 = vmatprep.subr.bf16.mxu0 %v1588_v49 }
  0x3d   :  { %1551 = vmatpush3.bf16.msra.mxu1 %v1548_v19 }
  0x3e   :  { %1553 = vmatprep.subr.bf16.mxu1 %v1552_v22  ;;  %1591 = vmatpush3.bf16.msra.mxu0 %v1588_v49 }
  0x3f   :  { %1593 = vmatprep.subr.bf16.mxu0 %v1592_v56 }
  0x41   :  { %1555 = vmatpush3.bf16.msra.mxu1 %v1552_v22 }
  0x42   :  { %1557 = vmatprep.subr.bf16.mxu1 %v1556_v25  ;;  %1595 = vmatpush3.bf16.msra.mxu0 %v1592_v56 }
  0x43   :  { %1597 = vmatprep.subr.bf16.mxu0 %v1596_v59 }
  0x45   :  { %1559 = vmatpush3.bf16.msra.mxu1 %v1556_v25  ;;  %v346_v25 = vshrl.u32 %v345_v24, 7 }
  0x46   :  { %1561 = vmatprep.subr.bf16.mxu1 %v1560_v28  ;;  %1599 = vmatpush3.bf16.msra.mxu0 %v1596_v59 }
  0x47   :  { %1601 = vmatprep.subr.bf16.mxu0 %v1600_v62  ;;  %v347_v26 = vadd.s32 8, %v346_v25 }
  0x49   :  { %1563 = vmatpush3.bf16.msra.mxu1 %v1560_v28  ;;  %v350_v28 = vand.u32 7, %v346_v25  ;;  %v351_v29 = vand.u32 7, %v347_v26 }
  0x4a   :  { %1565 = vmatprep.subr.bf16.mxu1 %v1564_v31  ;;  %1603 = vmatpush3.bf16.msra.mxu0 %v1600_v62 }
  0x4b   :  { %1605 = vmatprep.subr.bf16.mxu0 %v1604_v1  ;;  %vm1802_vm2 = vcmp.gt.s32.totalorder %v349_v27, %v350_v28  ;;  %vm1806_vm4 = vcmp.gt.s32.totalorder %v349_v27, %v351_v29 }
  0x4d   :  { %1567 = vmatpush3.bf16.msra.mxu1 %v1564_v31 }
  0x4e   :  { %1569 = vmatprep.subr.bf16.mxu1 %v1568_v34  ;;  %1607 = vmatpush3.bf16.msra.mxu0 %v1604_v1 }
  0x51   :  { %1571 = vmatpush3.bf16.msra.mxu1 %v1568_v34 }
  0x52   :  { %1573 = vmatprep.subr.bf16.mxu1 %v1572_v37 }
  0x55   :  { %1575 = vmatpush3.bf16.msra.mxu1 %v1572_v37 }
 0x10b   :  { %v1382_v50 = vpop.f32.mrb[0].mxu1 }
 0x10c   :  { %v174_v51 = vpop.f32.mrb[1].mxu1  ;;  %v184_v53 = vmul.f32 %v1382_v50, %v1382_v50 }
 0x10d   :  { %v183_v52 = vmul.f32 %v174_v51, %v174_v51 }
 0x10f   :  { %1415 = vmatprep.mubr.f32.mxu1 %v183_v52 }
 0x110   :  { %1416 = vmatmul.mubr.f32.vlgmr.msra.gmra.mrb[2].mxu1 %v184_v53 }
 0x1e3   :  { %v1417_v2 = vpop.f32.mrb[2].mxu1 }
 0x1e4   :  { %v257_v3 = vadd.f32 1e-06, %v1417_v2  ;;  %v251_v4 = vpop.f32.mrb[3].mxu1 }
 0x1e5   :  { %v252_v5 = vadd.f32 1e-06, %v251_v4 }
 0x1e6   :  { %1646 = vrsqrt.f32 %v257_v3 }
 0x1e7   :  { %1648 = vrsqrt.f32 %v252_v5 }
 0x1f0   :  { %v1647_v6 = vpop.eup %1646 }
 0x1f1   :  { %v1649_v7 = vpop.eup %1648  ;;  %v263_v8 = vmul.f32 %v1647_v6, %v1382_v50 }
 0x1f2   :  { %v262_v9 = vmul.f32 %v1649_v7, %v174_v51 }
 0x1f3   :  { %v265_v15 = vmul.f32 %v263_v8, %v82_v10 }
 0x1f4   :  { %1450 = vmatprep.mubr.f32.mxu0 %v262_v9  ;;  %v264_v18 = vmul.f32 %v262_v9, %v81_v12 }
 0x1f5   :  { %1451 = vmatmul.mubr.f32.vlgmr.msra.gmra.mrb[0].mxu0 %v263_v8 }
 0x2c8   :  { %v1452_v14 = vpop.f32.mrb[0].mxu0 }
 0x2c9   :  { %v342_v16 = vmul.f32 %v1452_v14, %v84_v11  ;;  %v332_v17 = vpop.f32.mrb[1].mxu0 }
 0x2ca   :  { %v341_v19 = vmul.f32 %v332_v17, %v83_v13 }
 0x2cb   :  { %v1785_v20 = vadd.f32 %v342_v16, %v265_v15 }
 0x2cc   :  { %v1787_v21 = vadd.f32 %v341_v19, %v264_v18 }
 0x2cd   :  { %1475 = vmatprep.mubr.msk.f32.mxu0 %vm359_vm1, %v1785_v20 }
 0x2ce   :  { %357 = vrot.lane.b32.xlu0 %v1787_v21, %s1734_s1  ;;  %1455 = vmatprep.mubr.msk.f32.mxu1 %vm359_vm1, %v1787_v21 }
 0x2d2   :  { %355 = vrot.lane.b32.xlu0 %v1787_v21, %s1735_s6 }
 0x2d6   :  { %765 = vrot.lane.b32.xlu0 %v1785_v20, %s1735_s6 }
 0x340   :  { %v358_v22 = vpop.permute.xlu0 %357 }
 0x341   :  { %1453 = vmatprep.subr.msk.mxu1 %vm359_vm1, %v358_v22 }
 0x342   :  { %1454 = vmatpush3.xpose.msk.msra.mxu1 %vm359_vm1, %v358_v22 }
 0x344   :  { %v356_v23 = vpop.permute.xlu0 %355 }
 0x345   :  { %1456 = vmatmul.mubr.msk.f32.vlgmr.msra.gmra.mrb[4].mxu1 %vm359_vm1, %v356_v23 }
 0x348   :  { %v766_v53 = vpop.permute.xlu0 %765 }
 0x418   :  { %v1457_v31 = vpop.f32.mrb[4].mxu1 }
 0x419   :  { %v432_v33 = vpop.f32.mrb[5].mxu1  ;;  %v442_v36 = vsel %vm1806_vm4, -1e+30, %v1457_v31 }
 0x41a   :  { %v441_v34 = vsel %vm1802_vm2, -1e+30, %v432_v33  ;;  %v447_v37 = vsel %vm443_vm3, %v442_v36, -inf }
 0x41b   :  { %v444_v35 = vsel %vm443_vm3, %v441_v34, -inf }
 0x41c   :  { %445 = vmax.xlane.f32.xlu1 %v444_v35 }
 0x420   :  { %448 = vmax.xlane.f32.xlu1 %v447_v37 }
 0x431   :  { %466 = vrot.lane.b32.xlu1 %v1787_v21, %s1736_s7 }
 0x435   :  { %561 = vrot.lane.b32.xlu1 %v1787_v21, %s1737_s8 }
 0x439   :  { %557 = vrot.lane.b32.xlu1 %v1787_v21, %s1738_s9 }
 0x43d   :  { %559 = vrot.lane.b32.xlu1 %v356_v23, %s1738_s9 }
 0x441   :  { %767 = vrot.lane.b32.xlu1 %v1785_v20, %s1734_s1 }
 0x4a9   :  { %v446_v38 = vpop.xlane.xlu1 %445 }
 0x4aa   :  { %v450_v39 = vsub.f32 %v441_v34, %v446_v38 }
 0x4ac   :  { %v452_v40 = vmul.f32 1.442695, %v450_v39 }
 0x4ad   :  { %v449_v41 = vpop.xlane.xlu1 %448 }
 0x4ae   :  { %1650 = vpow2.f32 %v452_v40  ;;  %v451_v42 = vsub.f32 %v442_v36, %v449_v41 }
 0x4b0   :  { %v454_v43 = vmul.f32 1.442695, %v451_v42 }
 0x4b1   :  { %v467_v44 = vpop.permute.xlu1 %466 }
 0x4b2   :  { %1652 = vpow2.f32 %v454_v43  ;;  %1458 = vmatprep.subr.mxu1 %v467_v44 }
 0x4b3   :  { %1459 = vmatpush3.msra.mxu1 %v467_v44 }
 0x4b5   :  { %v562_v45 = vpop.permute.xlu1 %561 }
 0x4b6   :  { %1463 = vmatprep.subr.msk.mxu1 %vm359_vm1, %v562_v45 }
 0x4b8   :  { %v1651_v46 = vpop.eup %1650 }
 0x4b9   :  { %v558_v47 = vpop.permute.xlu1 %557  ;;  %v456_v48 = vsel %vm443_vm3, %v1651_v46, 0.0 }
 0x4ba   :  { %457 = vadd.xlane.f32.xlu1 %v456_v48 }
 0x4bc   :  { %v1653_v49 = vpop.eup %1652 }
 0x4bd   :  { %v560_v50 = vpop.permute.xlu1 %559  ;;  %v459_v51 = vsel %vm443_vm3, %v1653_v49, 0.0 }
 0x4be   :  { %460 = vadd.xlane.f32.xlu0 %v459_v51 }
 0x4c1   :  { %v768_v52 = vpop.permute.xlu1 %767 }
 0x4c2   :  { %1473 = vmatprep.subr.msk.mxu0 %vm359_vm1, %v768_v52 }
 0x4c3   :  { %1474 = vmatpush3.xpose.msk.msra.mxu0 %vm359_vm1, %v768_v52 }
 0x4c6   :  { %1476 = vmatmul.mubr.msk.f32.vlgmr.msra.gmra.mrb[2].mxu0 %vm359_vm1, %v766_v53 }
 0x4cb   :  { %970 = vrot.lane.b32.xlu1 %v1785_v20, %s1738_s9 }
 0x4cf   :  { %972 = vrot.lane.b32.xlu1 %v766_v53, %s1738_s9 }
 0x4d4   :  { %974 = vrot.lane.b32.xlu0 %v1785_v20, %s1737_s8 }
 0x547   :  { %v458_v54 = vpop.xlane.xlu1 %457 }
 0x548   :  { %1654 = vrcp.f32 %v458_v54 }
 0x54b   :  { %v461_v55 = vpop.xlane.xlu0 %460  ;;  %v971_v56 = vpop.permute.xlu1 %970 }
 0x54c   :  { %1656 = vrcp.f32 %v461_v55  ;;  %1485 = vmatprep.mubr.msk.f32.mxu0 %vm359_vm1, %v971_v56 }
 0x54f   :  { %v975_v57 = vpop.permute.xlu0 %974  ;;  %v973_v59 = vpop.permute.xlu1 %972 }
 0x550   :  { %1483 = vmatprep.subr.msk.mxu0 %vm359_vm1, %v975_v57 }
 0x551   :  { %1484 = vmatpush3.xpose.msk.msra.mxu0 %vm359_vm1, %v975_v57 }
 0x552   :  { %v1655_v58 = vpop.eup %1654 }
 0x553   :  { %v463_v60 = vmul.f32 %v1655_v58, %v1651_v46 }
 0x554   :  { %1486 = vmatmul.mubr.msk.f32.vlgmr.msra.gmra.mrb[4].mxu0 %vm359_vm1, %v973_v59 }
 0x555   :  { %1460 = vmatprep.mubr.msk.f32.mxu1 %vm443_vm3, %v463_v60 }
 0x556   :  { %v1657_v61 = vpop.eup %1656 }
 0x557   :  { %v465_v62 = vmul.f32 %v1657_v61, %v1653_v49 }
 0x559   :  { %1461 = vmatmul.mubr.msk.f32.vlgmr.msra.gmra.mrb[6].mxu1 %vm443_vm3, %v465_v62 }
 0x55a   :  { %1464 = vmatpush3.xpose.msk.msra.mxu1 %vm359_vm1, %v562_v45  ;;  %1465 = vmatprep.mubr.msk.f32.mxu1 %vm359_vm1, %v558_v47 }
 0x55d   :  { %1466 = vmatmul.mubr.msk.f32.vlgmr.msra.gmra.mrb[8].mxu1 %vm359_vm1, %v560_v50 }
 0x599   :  { %v1477_v63 = vpop.f32.mrb[2].mxu0 }
 0x59a   :  { %v841_v0 = vpop.f32.mrb[3].mxu0  ;;  %v851_v15 = vsel %vm1806_vm4, -1e+30, %v1477_v63 }
 0x59b   :  { %v850_v12 = vsel %vm1802_vm2, -1e+30, %v841_v0  ;;  %v855_v16 = vsel %vm443_vm3, %v851_v15, -inf }
 0x59c   :  { %v852_v14 = vsel %vm443_vm3, %v850_v12, -inf }
 0x627   :  { %v1487_v1 = vpop.f32.mrb[4].mxu0 }
 0x628   :  { %v1048_v2 = vpop.f32.mrb[5].mxu0  ;;  %v1058_v17 = vsel %vm1806_vm4, -1e+30, %v1487_v1 }
 0x629   :  { %v1057_v10 = vsel %vm1802_vm2, -1e+30, %v1048_v2  ;;  %v1062_v18 = vsel %vm443_vm3, %v1058_v17, -inf }
 0x62a   :  { %v1059_v13 = vsel %vm443_vm3, %v1057_v10, -inf }
 0x62c   :  { %v1845_v3 = vpop.f32.mrb[6].mxu1 }
 0x62d   :  { %v541_v4 = vpop.f32.mrb[7].mxu1 }
 0x62e   :  { %550 = vst.msk [vmem:[#allocation2] sm:$0xff] %vm359_vm1, %v541_v4 }
 0x630   :  { %v1467_v5 = vpop.f32.mrb[8].mxu1 }
 0x631   :  { %v645_v6 = vsel %vm1806_vm4, -1e+30, %v1467_v5  ;;  %v635_v7 = vpop.f32.mrb[9].mxu1 }
 0x632   :  { %v644_v8 = vsel %vm1802_vm2, -1e+30, %v635_v7  ;;  %v649_v9 = vsel %vm443_vm3, %v645_v6, -inf  ;;  %v85_v7 = vld [vmem:[#allocation5 + $0x160] sm:$0xff] }
 0x633   :  { %650 = vmax.xlane.f32.xlu0 %v649_v9  ;;  %v646_v11 = vsel %vm443_vm3, %v644_v8, -inf  ;;  %v87_v9 = vld [vmem:[#allocation5 + $0x170] sm:$0xff] }
 0x634   :  { %647 = vmax.xlane.f32.xlu1 %v646_v11 }
 0x637   :  { %1060 = vmax.xlane.f32.xlu0 %v1059_v13 }
 0x638   :  { %853 = vmax.xlane.f32.xlu1 %v852_v14  ;;  %v89_v14 = vld [vmem:[#allocation5 + $0x180] sm:$0xff] }
 0x63c   :  { %856 = vmax.xlane.f32.xlu1 %v855_v16 }
 0x640   :  { %1063 = vmax.xlane.f32.xlu1 %v1062_v18  ;;  %v92_v18 = vld [vmem:[#allocation5 + $0x198] sm:$0xff] }
 0x6c0   :  { %v651_v19 = vpop.xlane.xlu0 %650 }
 0x6c1   :  { %v648_v22 = vpop.xlane.xlu1 %647  ;;  %v653_v33 = vsub.f32 %v645_v6, %v651_v19 }
 0x6c2   :  { %v652_v27 = vsub.f32 %v644_v8, %v648_v22  ;;  %v86_v8 = vld [vmem:[#allocation5 + $0x168] sm:$0xff]  ;;  %v93_v22 = vld [vmem:[#allocation5 + $0x1a0] sm:$0xff] }
 0x6c3   :  { %v656_v37 = vmul.f32 1.442695, %v653_v33  ;;  %v1609_v11 = vpack.c.bf16 %v86_v8, %v85_v7  ;;  %v100_v33 = vld [vmem:[#allocation5 + $0x1d8] sm:$0xff] }
 0x6c4   :  { %v1061_v23 = vpop.xlane.xlu0 %1060  ;;  %v654_v34 = vmul.f32 1.442695, %v652_v27 }
 0x6c5   :  { %v1065_v24 = vsub.f32 %v1057_v10, %v1061_v23  ;;  %v854_v25 = vpop.xlane.xlu1 %853  ;;  %v1740_v10 = vmov 0.0|0.0   ;;  %v94_v23 = vld [vmem:[#allocation5 + $0x1a8] sm:$0xff] }
 0x6c6   :  { %v858_v26 = vsub.f32 %v850_v12, %v854_v25  ;;  %1608 = vmatprep.subr.bf16.mxu0 %v1740_v10  ;;  %v88_v12 = vld [vmem:[#allocation5 + $0x178] sm:$0xff]  ;;  %v95_v25 = vld [vmem:[#allocation5 + $0x1b0] sm:$0xff] }
 0x6c7   :  { %v1067_v28 = vmul.f32 1.442695, %v1065_v24  ;;  %1610 = vmatpush3.bf16.msra.mxu0 %v1609_v11  ;;  %v1612_v13 = vpack.c.bf16 %v88_v12, %v87_v9  ;;  %v1621_v24 = vpack.c.bf16 %v94_v23, %v93_v22 }
 0x6c8   :  { %v860_v29 = vmul.f32 1.442695, %v858_v26  ;;  %1611 = vmatprep.subr.bf16.mxu0 %v1740_v10  ;;  %v96_v26 = vld [vmem:[#allocation5 + $0x1b8] sm:$0xff] }
 0x6c9   :  { %v857_v30 = vpop.xlane.xlu1 %856  ;;  %v1624_v27 = vpack.c.bf16 %v96_v26, %v95_v25 }
 0x6ca   :  { %1658 = vpow2.f32 %v860_v29  ;;  %v859_v31 = vsub.f32 %v851_v15, %v857_v30  ;;  %v90_v15 = vld [vmem:[#allocation5 + $0x188] sm:$0xff] }
 0x6cb   :  { %1660 = vpow2.f32 %v1067_v28  ;;  %1613 = vmatpush3.bf16.msra.mxu0 %v1612_v13  ;;  %v1615_v16 = vpack.c.bf16 %v90_v15, %v89_v14  ;;  %v97_v28 = vld [vmem:[#allocation5 + $0x1c0] sm:$0xff]  ;;  %v98_v29 = vld [vmem:[#allocation5 + $0x1c8] sm:$0xff] }
 0x6cc   :  { %v862_v32 = vmul.f32 1.442695, %v859_v31  ;;  %1614 = vmatprep.subr.bf16.mxu0 %v1740_v10  ;;  %v1627_v30 = vpack.c.bf16 %v98_v29, %v97_v28  ;;  %v99_v31 = vld [vmem:[#allocation5 + $0x1d0] sm:$0xff] }
 0x6cd   :  { %v1064_v35 = vpop.xlane.xlu1 %1063 }
 0x6ce   :  { %1662 = vpow2.f32 %v862_v32  ;;  %v1066_v36 = vsub.f32 %v1058_v17, %v1064_v35  ;;  %v91_v17 = vld [vmem:[#allocation5 + $0x190] sm:$0xff]  ;;  %v1630_v35 = vpack.c.bf16 %v100_v33, %v99_v31 }
 0x6cf   :  { %1664 = vpow2.f32 %v654_v34  ;;  %1616 = vmatpush3.bf16.msra.mxu0 %v1615_v16  ;;  %v1618_v19 = vpack.c.bf16 %v92_v18, %v91_v17  ;;  %v1742_v34 = vmov 0.0  }
 0x6d0   :  { %v1069_v38 = vmul.f32 1.442695, %v1066_v36  ;;  %1617 = vmatprep.subr.bf16.mxu0 %v1740_v10  ;;  %1525 = vmatprep.mubr.msk.f32.mxu0 %vm1741_vm6, %v1742_v34 }
 0x6d2   :  { %1666 = vpow2.f32 %v1069_v38 }
 0x6d3   :  { %1668 = vpow2.f32 %v656_v37  ;;  %1619 = vmatpush3.bf16.msra.mxu0 %v1618_v19 }
 0x6d4   :  { %v1659_v39 = vpop.eup %1658  ;;  %1620 = vmatprep.subr.bf16.mxu0 %v1740_v10 }
 0x6d5   :  { %v864_v40 = vsel %vm443_vm3, %v1659_v39, 0.0  ;;  %v1661_v41 = vpop.eup %1660 }
 0x6d6   :  { %865 = vadd.xlane.f32.xlu0 %v864_v40  ;;  %v1071_v43 = vsel %vm443_vm3, %v1661_v41, 0.0 }
 0x6d7   :  { %1622 = vmatpush3.bf16.msra.mxu0 %v1621_v24 }
 0x6d8   :  { %v1663_v42 = vpop.eup %1662  ;;  %1623 = vmatprep.subr.bf16.mxu0 %v1740_v10 }
 0x6d9   :  { %v867_v44 = vsel %vm443_vm3, %v1663_v42, 0.0  ;;  %v1665_v45 = vpop.eup %1664 }
 0x6da   :  { %1072 = vadd.xlane.f32.xlu0 %v1071_v43  ;;  %868 = vadd.xlane.f32.xlu1 %v867_v44  ;;  %v658_v47 = vsel %vm443_vm3, %v1665_v45, 0.0 }
 0x6db   :  { %1625 = vmatpush3.bf16.msra.mxu0 %v1624_v27 }
 0x6dc   :  { %v1667_v46 = vpop.eup %1666  ;;  %1626 = vmatprep.subr.bf16.mxu0 %v1740_v10 }
 0x6dd   :  { %v1074_v48 = vsel %vm443_vm3, %v1667_v46, 0.0  ;;  %v1669_v49 = vpop.eup %1668 }
 0x6de   :  { %659 = vadd.xlane.f32.xlu0 %v658_v47  ;;  %1075 = vadd.xlane.f32.xlu1 %v1074_v48  ;;  %v661_v50 = vsel %vm443_vm3, %v1669_v49, 0.0 }
 0x6df   :  { %1628 = vmatpush3.bf16.msra.mxu0 %v1627_v30 }
 0x6e0   :  { %1629 = vmatprep.subr.bf16.mxu0 %v1740_v10 }
 0x6e2   :  { %662 = vadd.xlane.f32.xlu1 %v661_v50 }
 0x6e3   :  { %1631 = vmatpush3.bf16.msra.mxu0 %v1630_v35 }
 0x6f3   :  { %874 = vrot.lane.b32.xlu1 %v1785_v20, %s1736_s7 }
 0x6f4   :  { %668 = vrot.lane.b32.xlu0 %v1787_v21, %s1739_s10 }
 0x6f7   :  { %1081 = vrot.lane.b32.xlu1 %v1785_v20, %s1739_s10 }
 0x6f8   :  { %552 = vrot.lane.b32.xlu0 %v1845_v3, %s1739_s10 }
 0x763   :  { %v866_v51 = vpop.xlane.xlu0 %865 }
 0x767   :  { %v1073_v52 = vpop.xlane.xlu0 %1072  ;;  %v869_v53 = vpop.xlane.xlu1 %868 }
 0x76b   :  { %v660_v54 = vpop.xlane.xlu0 %659  ;;  %v1076_v55 = vpop.xlane.xlu1 %1075 }
 0x76c   :  { %1670 = vrcp.f32 %v660_v54 }
 0x76d   :  { %1672 = vrcp.f32 %v866_v51 }
 0x76f   :  { %v669_v56 = vpop.permute.xlu0 %668  ;;  %v663_v57 = vpop.xlane.xlu1 %662 }
 0x770   :  { %1674 = vrcp.f32 %v663_v57  ;;  %1468 = vmatprep.subr.mxu1 %v669_v56 }
 0x771   :  { %1469 = vmatpush3.msra.mxu1 %v669_v56  ;;  %1676 = vrcp.f32 %v869_v53 }
 0x772   :  { %1678 = vrcp.f32 %v1073_v52 }
 0x773   :  { %v553_v21 = vpop.permute.xlu0 %552  ;;  %v875_v58 = vpop.permute.xlu1 %874  ;;  %1680 = vrcp.f32 %v1076_v55 }
 0x774   :  { %556 = vst.msk [vmem:[#allocation2] sm:$0xff] %vm555_vm5, %v553_v21  ;;  %1478 = vmatprep.subr.mxu1 %v875_v58 }
 0x776   :  { %v1671_v20 = vpop.eup %1670 }
 0x777   :  { %v665_v59 = vmul.f32 %v1671_v20, %v1665_v45  ;;  %v1673_v60 = vpop.eup %1672  ;;  %v1082_v2 = vpop.permute.xlu1 %1081 }
 0x778   :  { %v871_v0 = vmul.f32 %v1673_v60, %v1659_v39 }
 0x779   :  { %1470 = vmatprep.mubr.msk.f32.mxu1 %vm443_vm3, %v665_v59 }
 0x77a   :  { %v1675_v61 = vpop.eup %1674 }
 0x77b   :  { %v667_v62 = vmul.f32 %v1675_v61, %v1669_v49  ;;  %v1677_v63 = vpop.eup %1676 }
 0x77c   :  { %v1679_v1 = vpop.eup %1678  ;;  %v873_v3 = vmul.f32 %v1677_v63, %v1663_v42 }
 0x77d   :  { %1471 = vmatmul.mubr.msk.f32.vlgmr.msra.gmra.mrb[10].mxu1 %vm443_vm3, %v667_v62  ;;  %v1681_v4 = vpop.eup %1680  ;;  %v1078_v5 = vmul.f32 %v1679_v1, %v1661_v41 }
 0x77e   :  { %1479 = vmatpush3.msra.mxu1 %v875_v58  ;;  %1480 = vmatprep.mubr.msk.f32.mxu1 %vm443_vm3, %v871_v0  ;;  %v1080_v6 = vmul.f32 %v1681_v4, %v1667_v46 }
 0x77f   :  { %1488 = vmatprep.subr.mxu1 %v1082_v2 }
 0x781   :  { %1481 = vmatmul.mubr.msk.f32.vlgmr.msra.gmra.mrb[12].mxu1 %vm443_vm3, %v873_v3 }
 0x782   :  { %1489 = vmatpush3.msra.mxu1 %v1082_v2  ;;  %1490 = vmatprep.mubr.msk.f32.mxu1 %vm443_vm3, %v1078_v5 }
 0x785   :  { %1491 = vmatmul.mubr.msk.f32.vlgmr.msra.gmra.mrb[14].mxu1 %vm443_vm3, %v1080_v6 }
 0x850   :  { %v1472_v32 = vpop.f32.mrb[10].mxu1 }
 0x851   :  { %759 = vrot.lane.b32.xlu0 %v1472_v32, %s1737_s8  ;;  %v743_v36 = vpop.f32.mrb[11].mxu1 }
 0x852   :  { %753 = vrot.lane.b32.xlu1 %v743_v36, %s1736_s7 }
 0x854   :  { %v1482_v37 = vpop.f32.mrb[12].mxu1 }
 0x855   :  { %965 = vrot.lane.b32.xlu0 %v1482_v37, %s1743_s11  ;;  %v949_v38 = vpop.f32.mrb[13].mxu1 }
 0x856   :  { %959 = vrot.lane.b32.xlu1 %v949_v38, %s1734_s1 }
 0x858   :  { %v1492_v39 = vpop.f32.mrb[14].mxu1 }
 0x859   :  { %1172 = vrot.lane.b32.xlu0 %v1492_v39, %s1735_s6  ;;  %v1156_v40 = vpop.f32.mrb[15].mxu1 }
 0x85a   :  { %1166 = vrot.lane.b32.xlu1 %v1156_v40, %s1738_s9 }
 0x8c3   :  { %v760_v41 = vpop.permute.xlu0 %759 }
 0x8c4   :  { %v754_v42 = vpop.permute.xlu1 %753 }
 0x8c5   :  { %757 = vst.msk [vmem:[#allocation2] sm:$0xff] %vm756_vm7, %v754_v42 }
 0x8c6   :  { %763 = vst.msk [vmem:[#allocation2] sm:$0xff] %vm762_vm8, %v760_v41 }
 0x8c7   :  { %v966_v43 = vpop.permute.xlu0 %965 }
 0x8c8   :  { %v960_v44 = vpop.permute.xlu1 %959 }
 0x8c9   :  { %963 = vst.msk [vmem:[#allocation2] sm:$0xff] %vm962_vm9, %v960_v44 }
 0x8ca   :  { %969 = vst.msk [vmem:[#allocation2] sm:$0xff] %vm968_vm10, %v966_v43 }
 0x8cb   :  { %v1173_v46 = vpop.permute.xlu0 %1172 }
 0x8cc   :  { %v1167_v45 = vpop.permute.xlu1 %1166 }
 0x8cd   :  { %1170 = vst.msk [vmem:[#allocation2] sm:$0xff] %vm1169_vm11, %v1167_v45 }
 0x8ce   :  { %1176 = vst.msk [vmem:[#allocation2] sm:$0xff] %vm1175_vm12, %v1173_v46 }
 0x8d5   :  { %v1177_v47 = vld [vmem:[#allocation2] sm:$0xff] }
 0x8d6   :  { %1526 = vmatmul.mubr.f32.vlgmr.msra.gmra.mrb[6].mxu0 %v1177_v47 }
 0x9a9   :  { %v1244_v48 = vpop.f32.mrb[6].mxu0 }
 0x9aa   :  { %1248 = vst [vmem:[%s1893_s2] sm:$0xff] %v1244_v48  ;;  %v1527_v49 = vpop.f32.mrb[7].mxu0 }
 0x9ab   :  { %1253 = vsyncpa [#allocation4], 1 }
 0x9ac   :  { %1254 = vsyncpa [#allocation6], 1 }

</bundles_post_ra>
